<compile_context>
chip_gen: v6e
topology: v6e:2x2x1
jax: 0.10.0
libtpu: 0.0.40
codegen_flags: <defaults>
</compile_context>

<pallas_src>
import functools

import jax
import jax.numpy as jnp
from jax.experimental import pallas as pl
from jax.experimental.pallas import tpu as pltpu


# ----------------------------------------------------------------------------- kernel

def _layernorm_kernel(x_ref, a_ref, b_ref, o_ref, *, eps):
    """LayerNorm over the last (lane) axis for a (tile_n, d) row tile.

    Matches the PyTorch module exactly:
        mean = x.mean(-1, keepdim=True)
        std  = x.std(-1, keepdim=True)            # unbiased (Bessel) estimator
        y    = a_2 * (x - mean) / (std + eps) + b_2
    """
    x = x_ref[...].astype(jnp.float32)                       # (tile_n, d), f32 accumulation
    d = x.shape[-1]
    # Single-pass statistics: two *independent* per-row XLU reductions (sum, sum-of-squares)
    # instead of mean followed by a centered-squares reduce that depends on it.
    s = jnp.sum(x, axis=-1, keepdims=True)
    sq = jnp.sum(x * x, axis=-1, keepdims=True)
    mean = s * (1.0 / d)
    var = (sq - d * (mean * mean)) * (1.0 / (d - 1))          # unbiased, like torch.std
    var = jnp.maximum(var, 0.0)                               # guard tiny negative cancellation
    std = jnp.sqrt(var)
    # Exact divide (pl.reciprocal(approx=True) would add ~2^-12 relative drift; DMA is the
    # binding slot here so the EUP trick buys nothing measurable).
    inv = 1.0 / (std + eps)
    y = a_ref[...] * ((x - mean) * inv) + b_ref[...]
    o_ref[...] = y.astype(o_ref.dtype)


# ----------------------------------------------------------------------------- tiling

def _round_up(x, m):
    return ((x + m - 1) // m) * m


def _vmem_plan():
    """Per-generation scoped-VMEM limit and the budget used for tile sizing."""
    try:
        cap = int(pltpu.get_tpu_info().vmem_capacity_bytes)   # per-TC physical VMEM
    except Exception:                                         # pragma: no cover
        cap = 64 << 20                                        # conservative (v7x-sized)
    # Request half of physical VMEM, capped at 64 MiB:
    #   v5e/v6e (128 MiB physical) -> 64 MiB ; v7x (64 MiB physical) -> 32 MiB.
    vmem_limit = min(cap // 2, 64 << 20)
    # Leave headroom for the broadcast a_2/b_2 blocks and Mosaic internal scratch.
    budget = max(4 << 20, vmem_limit - (4 << 20))
    return vmem_limit, budget


def _pick_row_tile(n_rows, d, dtype, vmem_budget_bytes, *,
                   max_rows=2048, min_grid_blocks=8):
    """Largest sublane-aligned row tile whose double-buffered in+out DMA footprint plus
    in-kernel f32 temporaries fits the VMEM budget, while keeping >= ~min_grid_blocks grid
    steps (v7x megacore sharding + pipeline overlap)."""
    itemsize = jnp.dtype(dtype).itemsize
    sub = max(8, 32 // itemsize)                 # packed sublane multiple: 8 f32 / 16 bf16 / 32 i8
    # Per row: 2x input + 2x output buffers in the I/O dtype + ~3 f32 temporaries (x, xc, y).
    bytes_per_row = d * (4 * itemsize + 3 * 4)
    by_vmem = max(sub, vmem_budget_bytes // max(1, bytes_per_row))
    by_grid = max(sub, _round_up(-(-n_rows // min_grid_blocks), sub))   # keep grid >= ~8 blocks
    tile = min(max_rows, by_vmem, by_grid, _round_up(n_rows, sub))
    return max(sub, (tile // sub) * sub)


# ----------------------------------------------------------------------------- wrapper

def layer_norm(x2d, a_2, b_2, *, eps=1e-6):
    """x2d: [N, D]; a_2, b_2: [D]. Returns [N, D] (same dtype as x2d)."""
    n, d = x2d.shape
    # NOTE: d == 1 is degenerate for the unbiased estimator (divides by d-1), same as PyTorch.
    if d % 128 != 0:
        # Lane-sparse feature dim: a standalone Pallas kernel would pay masked vst partial
        # stores and ~0.35us/step overhead for <D/128 lane utilization; let XLA fuse it.
        mean = jnp.mean(x2d.astype(jnp.float32), axis=-1, keepdims=True)
        std = jnp.std(x2d.astype(jnp.float32), axis=-1, keepdims=True, ddof=1)
        y = a_2.astype(jnp.float32) * (x2d - mean) / (std + eps) + b_2.astype(jnp.float32)
        return y.astype(x2d.dtype)

    vmem_limit, vmem_budget = _vmem_plan()
    tile_n = _pick_row_tile(n, d, x2d.dtype, vmem_budget)
    grid = -(-n // tile_n)                       # ragged last block: OOB reads unused, stores masked

    a2 = a_2.reshape(1, d).astype(jnp.float32)
    b2 = b_2.reshape(1, d).astype(jnp.float32)
    kernel = functools.partial(_layernorm_kernel, eps=eps)

    return pl.pallas_call(
        kernel,
        out_shape=jax.ShapeDtypeStruct((n, d), x2d.dtype),
        grid_spec=pltpu.PrefetchScalarGridSpec(
            num_scalar_prefetch=0,
            grid=(grid,),
            in_specs=[
                pl.BlockSpec((tile_n, d), lambda i: (i, 0)),   # x row tile (lane-dense, full D)
                pl.BlockSpec((1, d), lambda i: (0, 0)),        # a_2 (broadcast, stays resident)
                pl.BlockSpec((1, d), lambda i: (0, 0)),        # b_2 (broadcast, stays resident)
            ],
            out_specs=pl.BlockSpec((tile_n, d), lambda i: (i, 0)),
        ),
        compiler_params=pltpu.CompilerParams(
            dimension_semantics=("parallel",),                 # rows independent -> multi-TC friendly
            vmem_limit_bytes=int(vmem_limit),
        ),
    )(x2d, a2, b2)


def encoder_forward(x, mask, layers, a_2, b_2, *, eps=1e-6):
    """Encoder.forward: pass x (and mask) through each layer in turn, then LayerNorm."""
    # TODO(synk): EncoderLayer (self-attention + feed-forward sublayers) is not part of the
    # provided spec; layers are opaque (x, mask) -> x callables supplied by the caller.
    # If the last layer were a kernel we controlled, this LN should be fused into its output
    # epilogue (saves one full HBM read+write of the activations); as a standalone stage it
    # runs as the Pallas kernel above.
    for layer in layers:
        x = layer(x, mask)
    b, s, d = x.shape
    y = layer_norm(x.reshape(b * s, d), a_2, b_2, eps=eps)
    return y.reshape(b, s, d)


def _encoder_ref(x, mask, layers, a_2, b_2, eps=1e-6):
    for layer in layers:
        x = layer(x, mask)
    mean = x.mean(-1, keepdims=True)
    std = jnp.std(x, axis=-1, keepdims=True, ddof=1)   # torch.std (unbiased), eps outside sqrt
    return a_2 * (x - mean) / (std + eps) + b_2


if __name__ == "__main__":
    # seq=9 makes the row count (18) ragged w.r.t. the 8-row tile, exercising the
    # no-pad masked-last-block path; hidden=128 keeps the output lane-dense.
    B, S, D = 2, 9, 128
    N_LAYERS = 2

    key = jax.random.PRNGKey(0)
    k1, k2, k3 = jax.random.split(key, 3)
    x = jax.random.normal(k1, (B, S, D), dtype=jnp.float32)
    mask = jnp.ones((B, 1, S), dtype=jnp.float32)
    # LayerNorm affine params (init is ones/zeros; perturb so the affine path is exercised).
    a_2 = 1.0 + 0.1 * jax.random.normal(k2, (D,), dtype=jnp.float32)
    b_2 = 0.1 * jax.random.normal(k3, (D,), dtype=jnp.float32)

    # Placeholder layers (EncoderLayer is not specified in the spec): identity callables.
    layers = [(lambda x, mask: x) for _ in range(N_LAYERS)]

    out = encoder_forward(x, mask, layers, a_2, b_2)
    out = jax.block_until_ready(out)

    ref = _encoder_ref(x, mask, layers, a_2, b_2)
    assert out.shape == (B, S, D)
    err = float(jnp.max(jnp.abs(out - ref)))
    assert jnp.allclose(out, ref, atol=1e-5, rtol=1e-5), f"max abs err = {err}"

    print("KERNEL_OK")
</pallas_src>

<mosaic_0001>
module attributes {stable_mosaic.version = 11 : i64} {
  func.func @_layernorm_kernel(%arg0: i32, %arg1: memref<8x128xf32, #tpu.memory_space<vmem>>, %arg2: memref<1x128xf32, #tpu.memory_space<vmem>>, %arg3: memref<1x128xf32, #tpu.memory_space<vmem>>, %arg4: memref<8x128xf32, #tpu.memory_space<vmem>>) attributes {dimension_semantics = [#tpu.dimension_semantics<parallel>], iteration_bounds = array<i64: 3>, scalar_prefetch = 0 : i64, scratch_operands = 0 : i64, tpu.core_type = #tpu.core_type<tc>, window_params = [{transform_indices = @transform_0, window_bounds = array<i64: 8, 128>}, {pipeline_mode = #tpu.pipeline_mode<synchronous>, transform_indices = @transform_1, window_bounds = array<i64: 1, 128>}, {pipeline_mode = #tpu.pipeline_mode<synchronous>, transform_indices = @transform_2, window_bounds = array<i64: 1, 128>}, {transform_indices = @transform_3, window_bounds = array<i64: 8, 128>}]} {
    %c0 = arith.constant 0 : index
    %c0_0 = arith.constant 0 : index
    %0 = vector.load %arg1[%c0, %c0_0] : memref<8x128xf32, #tpu.memory_space<vmem>>, vector<8x128xf32>
    %cst = arith.constant dense<0.000000e+00> : vector<8xf32>
    %1 = vector.multi_reduction <add>, %0, %cst [1] : vector<8x128xf32> to vector<8xf32>
    %2 = vector.shape_cast %1 : vector<8xf32> to vector<8x1xf32>
    %3 = arith.mulf %0, %0 : vector<8x128xf32>
    %cst_1 = arith.constant dense<0.000000e+00> : vector<8xf32>
    %4 = vector.multi_reduction <add>, %3, %cst_1 [1] : vector<8x128xf32> to vector<8xf32>
    %5 = vector.shape_cast %4 : vector<8xf32> to vector<8x1xf32>
    %cst_2 = arith.constant 7.812500e-03 : f32
    %6 = vector.broadcast %cst_2 : f32 to vector<8x1xf32>
    %7 = arith.mulf %2, %6 : vector<8x1xf32>
    %8 = arith.mulf %7, %7 : vector<8x1xf32>
    %cst_3 = arith.constant 1.280000e+02 : f32
    %9 = vector.broadcast %cst_3 : f32 to vector<8x1xf32>
    %10 = arith.mulf %9, %8 : vector<8x1xf32>
    %11 = arith.subf %5, %10 : vector<8x1xf32>
    %cst_4 = arith.constant 0.00787401571 : f32
    %12 = vector.broadcast %cst_4 : f32 to vector<8x1xf32>
    %13 = arith.mulf %11, %12 : vector<8x1xf32>
    %cst_5 = arith.constant 0.000000e+00 : f32
    %14 = vector.broadcast %cst_5 : f32 to vector<8x1xf32>
    %15 = arith.maximumf %13, %14 : vector<8x1xf32>
    %16 = math.sqrt %15 : vector<8x1xf32>
    %cst_6 = arith.constant 9.99999997E-7 : f32
    %17 = vector.broadcast %cst_6 : f32 to vector<8x1xf32>
    %18 = arith.addf %16, %17 : vector<8x1xf32>
    %cst_7 = arith.constant 1.000000e+00 : f32
    %19 = vector.broadcast %cst_7 : f32 to vector<8x1xf32>
    %20 = arith.divf %19, %18 : vector<8x1xf32>
    %c0_8 = arith.constant 0 : index
    %c0_9 = arith.constant 0 : index
    %21 = vector.load %arg2[%c0_8, %c0_9] : memref<1x128xf32, #tpu.memory_space<vmem>>, vector<1x128xf32>
    %22 = vector.broadcast %7 : vector<8x1xf32> to vector<8x128xf32>
    %23 = arith.subf %0, %22 : vector<8x128xf32>
    %24 = vector.broadcast %20 : vector<8x1xf32> to vector<8x128xf32>
    %25 = arith.mulf %23, %24 : vector<8x128xf32>
    %26 = vector.broadcast %21 : vector<1x128xf32> to vector<8x128xf32>
    %27 = arith.mulf %26, %25 : vector<8x128xf32>
    %c0_10 = arith.constant 0 : index
    %c0_11 = arith.constant 0 : index
    %28 = vector.load %arg3[%c0_10, %c0_11] : memref<1x128xf32, #tpu.memory_space<vmem>>, vector<1x128xf32>
    %29 = vector.broadcast %28 : vector<1x128xf32> to vector<8x128xf32>
    %30 = arith.addf %27, %29 : vector<8x128xf32>
    %c0_12 = arith.constant 0 : index
    %c0_13 = arith.constant 0 : index
    %31 = vector.load %arg4[%c0_12, %c0_13] : memref<8x128xf32, #tpu.memory_space<vmem>>, vector<8x128xf32>
    tpu.vector_store %arg4[%c0_12, %c0_13], %30 {strides = array<i32>} : memref<8x128xf32, #tpu.memory_space<vmem>>, vector<8x128xf32>,
    return
  }
  func.func @transform_0(%arg0: i32) -> (i32, i32) {
    %c0_i32 = arith.constant 0 : i32
    %c0_i32_0 = arith.constant 0 : i32
    return %arg0, %c0_i32 : i32, i32
  }
  func.func @transform_1(%arg0: i32) -> (i32, i32) {
    %c0_i32 = arith.constant 0 : i32
    %c0_i32_0 = arith.constant 0 : i32
    %c0_i32_1 = arith.constant 0 : i32
    return %c0_i32, %c0_i32_0 : i32, i32
  }
  func.func @transform_2(%arg0: i32) -> (i32, i32) {
    %c0_i32 = arith.constant 0 : i32
    %c0_i32_0 = arith.constant 0 : i32
    %c0_i32_1 = arith.constant 0 : i32
    return %c0_i32, %c0_i32_0 : i32, i32
  }
  func.func @transform_3(%arg0: i32) -> (i32, i32) {
    %c0_i32 = arith.constant 0 : i32
    %c0_i32_0 = arith.constant 0 : i32
    return %arg0, %c0_i32 : i32, i32
  }
}

</mosaic_0001>

<bundles_post_ra>
// kernel: tpu_custom_call.1
= control target key start
LH: loop header
LB: loop body
LE: loop exit
PB: predicated region body
PF: predicated region fallthrough
CT: control target
= control target key end

     0   :  { %8 = vsyncpa [#allocation3], 0  ;;  %s640_s0 = inlined_call_operand.hbm [shape: f32[18,128], index: 0, kind: input, shape index: {}]   ;;  %s641_s1 = inlined_call_operand.vmem [shape: f32[1,128], index: 1, kind: input, shape index: {}]   ;;  %s642_s2 = inlined_call_operand.vmem [shape: f32[1,128], index: 2, kind: input, shape index: {}]   ;;  %s643_s3 = inlined_call_operand.hbm [shape: f32[18,128], index: 3, kind: output, shape index: {}]  }
   0x1   :  { %10 = vsyncpa [#allocation3 + $0x1], 0 }
   0x2   :  { %11 = vsyncpa [#allocation4], 0 }
   0x3   :  { %13 = vsyncpa [#allocation4 + $0x1], 0  ;;  %s491_s12 = smov 0   ;;  %s493_s13 = smov 0  }
   0x4   :  { %s495_s14 = smov 0   ;;  %s497_s15 = smov 0  }
   0x5 LB: > { %s512_s16 = sadd.s32 4294967295, %s467_s15   ;;  %s311_s17 = sadd.s32 4294967294, %s467_s15   ;;  %s467_s15 = sphi %s497_s15, %s659_s15   ;;  %s463_s14 = sphi %s495_s14, %s658_s14   ;;  %s459_s13 = sphi %s493_s13, %s657_s13   ;;  %s455_s12 = sphi %s491_s12, %s656_s12  }
   0x6   : > { %s516_s18 = sadd.s32 1, %s467_s15   ;;  %s26_s19 = sadd.s32 1, %s463_s14 }
   0x7   : > { %s23_s20 = ssub.s32 %s467_s15, %s516_s18  ;;  %p33_p0 = scmp.ne.s32.totalorder %s463_s14, %s459_s13 }
   0x8   : > { %p24_p1 = scmp.eq.s32.totalorder %s23_s20, 0  ;;  %p34_p2 = scmp.eq.s32.totalorder %s467_s15, 0 }
   0x9   : > { %p39_p3 = scmp.ne.s32.totalorder %s459_s13, %s455_s12  ;;  %p40_p4 = scmp.eq.s32.totalorder %s512_s16, 0 }
   0xa   : > { %s528_s21 = scalar_select %p24_p1, %s463_s14, %s26_s19  }
   0xb   : > { %p530_p5 = por %p34_p2, %p33_p0  ;;  %p534_p6 = por %p40_p4, %p39_p3 }
   0xc   : > { %p105_p7 = scmp.eq.s32.totalorder %s512_s16, 2  ;;  %p111_p8 = scmp.eq.s32.totalorder %s311_s17, 2 }
   0xd   : > { %s647_s23 = scalar_select %p534_p6, 1, 0 }
   0xe   : > { %p337_p9 = scmp.lt.s32.totalorder %s467_s15, 3  ;;  %p540_p10 = por %p105_p7, %p33_p0 }
   0xf   : > { %p544_p11 = por %p111_p8, %p39_p3  ;;  %s137_s26 = sand.u32 1, %s463_s14  }
  0x10   : > { %s648_s24 = scalar_select %p540_p10, 1, 0 }
  0x11   : > { %s649_s25 = scalar_select %p544_p11, 1, 0 }
  0x12   : > { %s315_s27 = sshll.u32 %s467_s15, 7  ;;  %s314_s28 = sshll.u32 %s137_s26, 3 }
  0x13   : > { %s553_s4 = scalar_lea.hbm %s640_s0, %s315_s27  ;;  %s141_s5 = scalar_lea.vmem [#allocation2], %s314_s28 }
  0x14   : > { %s148_s6 = sshll.u32 %s141_s5, 4  ;;  %p557_p12 = pnand %p337_p9, %p530_p5  ;;  %s561_s6 = int_to_ptr.vmem [resolvable:$true] %s148_s6 }
  0x15   : > { %s138_s8 = scalar_lea.sflag [#allocation3], %s137_s26  ;;  %s375_s9 = scalar_lea.hbm %s553_s4, 128 }
  0x16   : > { %p376_p1 = scmp.ne.s32.totalorder %s553_s4, %s375_s9  ;;  %p377_p2 = pneg %p557_p12 }
  0x17   : > { %s380_s17 = scalar_lea.hbm %s640_s0, 384  ;;  %p381_p5 = scmp.lt.s32.totalorder %s553_s4, %s640_s0 }
  0x18   : > { %p378_p3 = pnand %p377_p2, %p376_p1  ;;  %p382_p7 = scmp.lt.s32.totalorder %s380_s17, %s375_s9 }
  0x1a   : > { %p379_p4 = pneg %p378_p3  ;;  %p383_p8 = por %p382_p7, %p381_p5 }
  0x1c   : > { %p384_p9 = pnand %p383_p8, %p379_p4 }
  0x1e   : > { %387 = shalt.err (!%p384_p9)
}
  0x1f   : > { %s388_s22 = scalar_lea.vmem %s561_s6, 128  ;;  %s469_s26 = smov [#allocation2]  }
  0x20   : > { %p389_p13 = scmp.ne.s32.totalorder %s561_s6, %s388_s22  ;;  %s393_s27 = sshll.u32 %s469_s26, 4  ;;  %s394_s27 = int_to_ptr.vmem [resolvable:$false] %s393_s27 }
  0x21   : > { %s395_s28 = scalar_lea.vmem %s394_s27, 256  ;;  %p396_p3 = scmp.lt.s32.totalorder %s561_s6, %s394_s27 }
  0x22   : > { %p391_p0 = pnand %p389_p13, %p377_p2  ;;  %p397_p11 = scmp.lt.s32.totalorder %s395_s28, %s388_s22 }
  0x24   : > { %p392_p1 = pneg %p391_p0  ;;  %p398_p10 = por %p397_p11, %p396_p3 }
  0x26   : > { %p399_p6 = pnand %p398_p10, %p392_p1 }
  0x28   : > { %402 = shalt.err (!%p399_p6)
}
  0x29   : > { %332 = dma.hbm_to_vmem [thread:$0]  (!%p557_p12), %s553_s4, 128, %s561_s6, %s138_s8  }
  0x2a   : > { %p651_p4 = scmp.lt.s32.totalorder %s467_s15, 4  ;;  %p652_p5 = scmp.ge.s32.totalorder %s467_s15, 1 }
  0x2c   : > { %p154_p13 = pnand %p652_p5, %p651_p4 }
  0x2d   : > { %s588_s29 = sand.u32 (!%p154_p13), 1, %s459_s13   ;;  %p653_p6 = scmp.ne.s32.totalorder (!%p154_p13), %s647_s23, 0 }
  0x2e   : > { %157 = sbr.rel (%p154_p13) target bundleno = 256 (0x100), region = 32  ;;  %s317_s30 = sshll.u32 (!%p154_p13), %s588_s29, 3 }
  0x2f   : > { %s160_s5 = scalar_lea.sflag (!%p154_p13), [#allocation3], %s588_s29  ;;  %s163_s7 = scalar_lea.vmem (!%p154_p13), [#allocation2], %s317_s30 }
  0x33   : > { %446 = dma.done.wait (%p653_p6), %s160_s5, 128  }
  0x34   : > { %448 = vsyncadd (%p653_p6), %s160_s5, 4294967168  ;;  %v186_v0 = vld [vmem:[%s163_s7] sm:$0xff]  ;;  %s322_s9 = sshll.u32 %s512_s16, 7  ;;  %s185_s10 = scalar_lea.vmem [#allocation5], %s317_s30 }
  0x35   : > { %187 = vadd.xlane.f32.xlu0 %v186_v0  ;;  %v189_v1 = vmul.f32 %v186_v0, %v186_v0  ;;  %v319_v18 = vld [vmem:[%s641_s1] ss:$0 sm:$0xff]  ;;  %s241_s11 = sshll.u32 %s185_s10, 4  ;;  %s239_s20 = scalar_lea.hbm %s643_s3, %s322_s9  ;;  %s242_s11 = int_to_ptr.vmem [resolvable:$true] %s241_s11 }
  0x36   : > { %v320_v20 = vld [vmem:[%s642_s2] ss:$0 sm:$0xff]  ;;  %s228_s22 = scalar_lea.sflag [#allocation4], %s588_s29  ;;  %s403_s26 = scalar_lea.vmem %s242_s11, 128 }
  0x37   : > { %p404_p10 = scmp.ne.s32.totalorder %s242_s11, %s403_s26  ;;  %p654_p11 = scmp.ne.s32.totalorder %s648_s24, 0 }
  0x38   : > { %s470_s27 = smov [#allocation5]  }
  0x39   : > { %190 = vadd.xlane.f32.xlu0 %v189_v1  ;;  %p405_p12 = pnand %p404_p10, %p654_p11  ;;  %s407_s28 = sshll.u32 %s470_s27, 4  ;;  %s408_s28 = int_to_ptr.vmem [resolvable:$false] %s407_s28 }
  0x3a   : > { %s409_s16 = scalar_lea.vmem %s408_s28, 256  ;;  %p410_p2 = scmp.lt.s32.totalorder %s242_s11, %s408_s28 }
  0x3b   : > { %p406_p0 = pneg %p405_p12  ;;  %p411_p7 = scmp.lt.s32.totalorder %s409_s16, %s403_s26 }
  0x3d   : > { %p412_p8 = por %p411_p7, %p410_p2 }
  0x3f   : > { %p413_p9 = pnand %p412_p8, %p406_p0 }
  0xbe   : > { %v188_v2 = vpop.xlane.xlu0 %187 }
  0xbf   : > { %v192_v3 = vmul.f32 0.0078125, %v188_v2 }
  0xc1   : > { %v193_v4 = vmul.f32 %v192_v3, %v192_v3  ;;  %v209_v16 = vsub.f32 %v186_v0, %v192_v3 }
  0xc2   : > { %v191_v5 = vpop.xlane.xlu0 %190 }
  0xc3   : > { %v194_v6 = vmul.f32 128.0, %v193_v4 }
  0xc5   : > { %v195_v7 = vsub.f32 %v191_v5, %v194_v6 }
  0xc7   : > { %v196_v8 = vmul.f32 0.007874016, %v195_v7 }
  0xc9   : > { %v197_v9 = vmax.f32 %v196_v8, 0.0 }
  0xcb   : > { %371 = vrsqrt.f32 %v197_v9  ;;  %vm200_vm0 = vcmp.eq.f32.partialorder %v197_v9, inf  ;;  %v203_v12 = vand.u32 2147483648, %v197_v9  ;;  %vm202_vm1 = vcmp.eq.f32.partialorder %v197_v9, 0.0 }
  0xd8   : > { %v372_v10 = vpop.eup %371 }
  0xd9   : > { %v199_v11 = vmul.f32 %v372_v10, %v197_v9 }
  0xdb   : > { %v201_v13 = vsel %vm200_vm0, %v197_v9, %v199_v11 }
  0xdc   : > { %v204_v14 = vsel %vm202_vm1, %v203_v12, %v201_v13 }
  0xdd   : > { %v205_v15 = vadd.f32 1e-06, %v204_v14 }
  0xdf   : > { %373 = vrcp.f32 %v205_v15 }
  0xec   : > { %v374_v17 = vpop.eup %373 }
  0xed   : > { %v210_v19 = vmul.f32 %v374_v17, %v209_v16 }
  0xef   : > { %v217_v21 = vmul.f32 %v319_v18, %v210_v19 }
  0xf1   : > { %v225_v22 = vadd.f32 %v320_v20, %v217_v21 }
  0xf3   : > { %226 = vst [vmem:[%s185_s10] sm:$0xff] %v225_v22 }
  0xf4   : > { %416 = shalt.err (!%p413_p9)
}
  0xf5   : > { %s417_s30 = scalar_lea.hbm %s239_s20, 128  ;;  %s421_s7 = scalar_lea.hbm %s643_s3, 384 }
  0xf6   : > { %p418_p1 = scmp.ne.s32.totalorder %s239_s20, %s417_s30  ;;  %p422_p5 = scmp.lt.s32.totalorder %s239_s20, %s643_s3 }
  0xf7   : > { %p423_p13 = scmp.lt.s32.totalorder %s421_s7, %s417_s30 }
  0xf8   : > { %p419_p3 = pnand %p418_p1, %p654_p11 }
  0xf9   : > { %p424_p6 = por %p423_p13, %p422_p5 }
  0xfa   : > { %p420_p4 = pneg %p419_p3 }
  0xfc   : > { %p425_p10 = pnand %p424_p6, %p420_p4 }
  0xfe   : > { %428 = shalt.err (!%p425_p10)
}
  0xff   : > { %327 = dma.vmem_to_hbm [thread:$0]  (%p654_p11), %s242_s11, 128, %s239_s20, %s228_s22  }
 0x100 PF: > { %p338_p12 = scmp.ge.s32.totalorder %s467_s15, 2  ;;  %s253_s6 = sand.u32 1, %s455_s12  }
 0x101   : > { %p655_p0 = scmp.ne.s32.totalorder %s649_s25, 0  ;;  %s254_s8 = scalar_lea.sflag [#allocation4], %s253_s6 }
 0x103   : > { %p334_p2 = pnand %p338_p12, %p655_p0 }
 0x105   : > { %p335_p7 = pneg %p334_p2 }
 0x107   : > { %450 = dma.done.wait (%p335_p7), %s254_s8, 128  }
 0x108   : > { %452 = vsyncadd (%p335_p7), %s254_s8, 4294967168  ;;  %p16_p8 = scmp.ge.s32.totalorder %s516_s18, 5   ;;  %s656_s12 = smov %s459_s13 }
 0x109   : > { %s657_s13 = smov %s463_s14  ;;  %s658_s14 = smov %s528_s21 }
 0x10a   : > { %s659_s15 = smov %s516_s18  ;;  %18 = sbr.rel (!%p16_p8) target bundleno = 5 (0x5), region = 77 }
 0x10f   :  { %259 = vsyncpa [#allocation3], 1 }
 0x110   :  { %261 = vsyncpa [#allocation3 + $0x1], 1 }
 0x111   :  { %262 = vsyncpa [#allocation4], 1 }
 0x112   :  { %264 = vsyncpa [#allocation4 + $0x1], 1 }

</bundles_post_ra>
